<compile_context>
chip_gen: v5e
topology: v5e:2x2
jax: 0.10.0
libtpu: 0.0.40
codegen_flags: <defaults>
</compile_context>

<pallas_src>
import jax
import jax.numpy as jnp
from jax import lax
from jax.experimental import pallas as pl
from jax.experimental.pallas import tpu as pltpu


# ----------------------------------------------------------------------------
# Pallas kernel factory
# ----------------------------------------------------------------------------
def _make_resblock_kernel(lt, cin, cout, K, dilation, pad, use_res_proj,
                          compute_dtype, accum_conv0, accum_conv1):

    def _conv(w_ref, ext, accum):
        # ext: (depth, lt + pad) in compute_dtype. Tap k of the causal dilated
        # conv reads ext[:, k*dilation : k*dilation + lt]. Result (cout, lt) f32.
        if K == 1:
            return jnp.dot(w_ref[...], ext, preferred_element_type=jnp.float32)
        if accum:
            # K accumulating matmuls (each already at full MXU depth); avoids
            # materializing the Kx im2col copy of the tile.
            acc = None
            for k in range(K):
                part = jnp.dot(w_ref[k], ext[:, k * dilation:k * dilation + lt],
                               preferred_element_type=jnp.float32)
                acc = part if acc is None else acc + part
            return acc
        # im2col: one matmul with contraction depth K*depth (small-channel case)
        xcat = jnp.concatenate(
            [ext[:, k * dilation:k * dilation + lt] for k in range(K)], axis=0)
        return jnp.dot(w_ref[...], xcat, preferred_element_type=jnp.float32)

    def kernel(*refs):
        it = iter(refs)
        x_ref = next(it)                      # (1, cin, lt)   input dtype (f32)
        w0_ref = next(it)                     # folded conv0 weights (bf16)
        b0_ref = next(it)                     # (cout, 1) f32
        w1_ref = next(it)                     # folded conv1 weights (bf16)
        b1_ref = next(it)                     # (cout, 1) f32
        if use_res_proj:
            wres_ref = next(it)               # (cout, cin) bf16
            bres_ref = next(it)               # (cout, 1)   f32
        out_ref = next(it)                    # (1, cout, lt)
        if pad > 0:
            xcar_ref = next(it)               # (cin,  pad) bf16 carry
            hcar_ref = next(it)               # (cout, pad) bf16 carry

        j = pl.program_id(1)
        if pad > 0:
            @pl.when(j == 0)
            def _():
                # causal zero padding at the start of the sequence
                xcar_ref[...] = jnp.zeros_like(xcar_ref)
                hcar_ref[...] = jnp.zeros_like(hcar_ref)

        x_in = x_ref[0, :, :]                          # (cin, lt) f32
        xc = x_in.astype(compute_dtype)                # bf16 MXU operand

        # --- conv0 + bias + ReLU (left context from the x carry) -------------
        xe = jnp.concatenate([xcar_ref[...], xc], axis=-1) if pad > 0 else xc
        h = jnp.maximum(_conv(w0_ref, xe, accum_conv0) + b0_ref[...], 0.0)
        # TODO(synk): dropout(p=0.2) is identity in eval mode; training-mode
        # dropout is not implemented in this kernel.
        hb = h.astype(compute_dtype)

        # --- conv1 + bias + ReLU (left context from the h carry) -------------
        he = jnp.concatenate([hcar_ref[...], hb], axis=-1) if pad > 0 else hb
        out = jnp.maximum(_conv(w1_ref, he, accum_conv1) + b1_ref[...], 0.0)

        # --- residual path ----------------------------------------------------
        if use_res_proj:
            res = jnp.dot(wres_ref[...], xc,
                          preferred_element_type=jnp.float32) + bres_ref[...]
        else:
            res = x_in.astype(jnp.float32)             # exact f32 identity skip

        out_ref[0, :, :] = (res + out).astype(out_ref.dtype)

        # --- update carries for the next L-tile -------------------------------
        if pad > 0:
            xcar_ref[...] = xc[:, lt - pad:]
            hcar_ref[...] = hb[:, lt - pad:]

    return kernel


# ----------------------------------------------------------------------------
# Wrapper helpers: weight folding, VMEM budgeting
# ----------------------------------------------------------------------------
def _fold_conv_weight(w, accum, compute_dtype):
    cout, cin, K = w.shape
    if K > 1 and accum:
        return jnp.transpose(w, (2, 0, 1)).astype(compute_dtype)     # (K, Cout, Cin)
    # tap-major im2col layout: block k of columns multiplies tap k
    return jnp.transpose(w, (0, 2, 1)).reshape(cout, K * cin).astype(compute_dtype)


def _per_lane_vmem_bytes(cin, cout, K, accum0, accum1, x_bytes, out_bytes):
    b = 2 * cin * x_bytes            # double-buffered input tile
    b += 2 * cout * out_bytes        # double-buffered output tile
    b += cin * 2                     # xe (bf16)
    b += cout * 4                    # h  (f32)
    b += 2 * cout * 2                # hb + he (bf16)
    b += 2 * cout * 4                # conv1 accumulator + residual (f32)
    if K > 1 and not accum0:
        b += K * cin * 2             # conv0 im2col copy
    if K > 1 and not accum1:
        b += K * cout * 2            # conv1 im2col copy
    return b


def _choose_l_tile(L, pad, per_lane_bytes, budget_bytes=24 << 20):
    """Largest lane-aligned tile dividing L that keeps live VMEM under budget."""
    cap = max(128, budget_bytes // max(per_lane_bytes, 1))
    if L <= cap:
        return L
    t = (min(cap, L) // 128) * 128
    while t >= 128:
        if L % t == 0 and t >= max(pad, 1):
            return t
        t -= 128
    return L


def _vmem_limit_bytes(per_lane_bytes, l_tile, weight_bytes):
    est = per_lane_bytes * l_tile + 2 * weight_bytes + (2 << 20)
    return int(min(max(32 << 20, int(1.5 * est)), 64 << 20))


def _const_spec(a):
    nd = a.ndim
    return pl.BlockSpec(tuple(a.shape), lambda n, j: (0,) * nd)


# ----------------------------------------------------------------------------
# Wrapper
# ----------------------------------------------------------------------------
def residual_block_1d(x, params, *, kernel_size, dilation, pad, l_tile=None,
                      compute_dtype=jnp.bfloat16, out_dtype=jnp.float32):
    """x: (N, Cin, L) in PyTorch NCL layout. Returns (N, Cout, L) in out_dtype."""
    N, Cin, L = x.shape
    w0, b0, w1, b1, wres, bres = params
    Cout = w0.shape[0]
    K = kernel_size
    assert pad == dilation * (K - 1), "causal TCN padding expected"

    use_res_proj = (Cin != Cout)
    accum_conv0 = (K > 1) and (Cin >= 256)
    accum_conv1 = (K > 1) and (Cout >= 256)

    per_lane = _per_lane_vmem_bytes(Cin, Cout, K, accum_conv0, accum_conv1,
                                    jnp.dtype(x.dtype).itemsize,
                                    jnp.dtype(out_dtype).itemsize)
    if l_tile is None:
        l_tile = _choose_l_tile(L, pad, per_lane)
    assert L % l_tile == 0
    assert l_tile == L or l_tile % 128 == 0, "l_tile must be lane-aligned"
    assert l_tile >= max(pad, 1), "l_tile must cover the causal pad"
    n_lt = L // l_tile

    # fold conv weights; weights/biases are tiny and stay VMEM-resident
    w0_f = _fold_conv_weight(w0, accum_conv0, compute_dtype)
    w1_f = _fold_conv_weight(w1, accum_conv1, compute_dtype)
    b0_c = b0.reshape(Cout, 1).astype(jnp.float32)
    b1_c = b1.reshape(Cout, 1).astype(jnp.float32)

    in_specs = [pl.BlockSpec((1, Cin, l_tile), lambda n, j: (n, 0, j)),
                _const_spec(w0_f), _const_spec(b0_c),
                _const_spec(w1_f), _const_spec(b1_c)]
    args = [x, w0_f, b0_c, w1_f, b1_c]
    if use_res_proj:
        wres_f = wres[:, :, 0].astype(compute_dtype)               # (Cout, Cin)
        bres_c = bres.reshape(Cout, 1).astype(jnp.float32)
        in_specs += [_const_spec(wres_f), _const_spec(bres_c)]
        args += [wres_f, bres_c]

    scratch_shapes = []
    if pad > 0:
        scratch_shapes = [pltpu.VMEM((Cin, pad), compute_dtype),    # x tail carry
                          pltpu.VMEM((Cout, pad), compute_dtype)]   # h tail carry

    kernel = _make_resblock_kernel(l_tile, Cin, Cout, K, dilation, pad,
                                   use_res_proj, compute_dtype,
                                   accum_conv0, accum_conv1)

    weight_bytes = sum(int(a.size) * jnp.dtype(a.dtype).itemsize for a in args[1:])
    vmem_limit = _vmem_limit_bytes(per_lane, l_tile, weight_bytes)

    # N axis parallel (feeds both TensorCores on megacore parts); L axis is
    # sequential ("arbitrary") because of the causal carry scratches.
    return pl.pallas_call(
        kernel,
        out_shape=jax.ShapeDtypeStruct((N, Cout, L), out_dtype),
        grid_spec=pltpu.PrefetchScalarGridSpec(
            num_scalar_prefetch=0,
            grid=(N, n_lt),
            in_specs=in_specs,
            out_specs=pl.BlockSpec((1, Cout, l_tile), lambda n, j: (n, 0, j)),
            scratch_shapes=scratch_shapes),
        compiler_params=pltpu.CompilerParams(
            dimension_semantics=("parallel", "arbitrary"),
            vmem_limit_bytes=vmem_limit),
    )(*args)


# ----------------------------------------------------------------------------
# Deterministic parameter init (weight_norm folded into effective weights)
# ----------------------------------------------------------------------------
def _apply_weight_norm(v, g):
    # PyTorch nn.utils.weight_norm, dim=0: w = g * v / ||v|| (norm over dims>0)
    norm = jnp.sqrt(jnp.sum(v * v, axis=tuple(range(1, v.ndim)), keepdims=True))
    return g.reshape((-1,) + (1,) * (v.ndim - 1)) * v / norm


def init_params(key, in_channels, out_channels, kernel_size):
    ks = jax.random.split(key, 9)
    v0 = 0.2 * jax.random.normal(ks[0], (out_channels, in_channels, kernel_size), jnp.float32)
    g0 = 1.0 + 0.3 * jax.random.normal(ks[1], (out_channels,), jnp.float32)
    b0 = 0.1 * jax.random.normal(ks[2], (out_channels,), jnp.float32)

    v1 = 0.2 * jax.random.normal(ks[3], (out_channels, out_channels, kernel_size), jnp.float32)
    g1 = 1.0 + 0.3 * jax.random.normal(ks[4], (out_channels,), jnp.float32)
    b1 = 0.1 * jax.random.normal(ks[5], (out_channels,), jnp.float32)

    vres = 0.2 * jax.random.normal(ks[6], (out_channels, in_channels, 1), jnp.float32)
    gres = 1.0 + 0.3 * jax.random.normal(ks[7], (out_channels,), jnp.float32)
    bres = 0.1 * jax.random.normal(ks[8], (out_channels,), jnp.float32)

    return (_apply_weight_norm(v0, g0), b0,
            _apply_weight_norm(v1, g1), b1,
            _apply_weight_norm(vres, gres), bres)


# ----------------------------------------------------------------------------
# Pure-JAX f32 reference (for correctness verification)
# ----------------------------------------------------------------------------
def ref_forward(x, params, *, kernel_size, dilation, pad):
    w0, b0, w1, b1, wres, bres = params

    def conv(inp, w, b, d, p):
        y = lax.conv_general_dilated(
            inp, w, window_strides=(1,), padding=[(p, 0)],
            rhs_dilation=(d,), dimension_numbers=("NCH", "OIH", "NCH"))
        return y + b[None, :, None]

    h = jnp.maximum(conv(x, w0, b0, dilation, pad), 0.0)
    out = jnp.maximum(conv(h, w1, b1, dilation, pad), 0.0)
    res = conv(x, wres, bres, 1, 0) if x.shape[1] != w0.shape[0] else x
    return res + out


# ----------------------------------------------------------------------------
if __name__ == "__main__":
    K, dilation = 3, 2
    pad = dilation * (K - 1)           # causal padding used by the TCN block
    L = 256

    key = jax.random.PRNGKey(0)
    kx1, kp1, kx2, kp2 = jax.random.split(key, 4)

    # Case 1: Cin != Cout (residual projection), l_tile=128 -> exercises the
    # cross-tile x/h carries.
    Cin1, Cout1 = 4, 8
    x1 = jax.random.normal(kx1, (2, Cin1, L), jnp.float32)
    p1 = init_params(kp1, Cin1, Cout1, K)
    y1 = jax.block_until_ready(residual_block_1d(
        x1, p1, kernel_size=K, dilation=dilation, pad=pad, l_tile=128))
    r1 = ref_forward(x1, p1, kernel_size=K, dilation=dilation, pad=pad)
    assert y1.shape == (2, Cout1, L)
    assert jnp.allclose(y1, r1, rtol=5e-2, atol=5e-2), "case1 (tiled) mismatch"

    # Same block with a single L-tile: must agree with the carry-tiled result.
    y1s = jax.block_until_ready(residual_block_1d(
        x1, p1, kernel_size=K, dilation=dilation, pad=pad, l_tile=L))
    assert jnp.allclose(y1s, r1, rtol=5e-2, atol=5e-2), "case1 (single) mismatch"
    assert jnp.allclose(y1, y1s, rtol=0.0, atol=1e-5), "carry tiling mismatch"

    # Case 2: Cin == Cout (identity residual, now exact f32 skip connection).
    Cin2 = Cout2 = 8
    x2 = jax.random.normal(kx2, (2, Cin2, L), jnp.float32)
    p2 = init_params(kp2, Cin2, Cout2, K)
    y2 = jax.block_until_ready(residual_block_1d(
        x2, p2, kernel_size=K, dilation=dilation, pad=pad))
    r2 = ref_forward(x2, p2, kernel_size=K, dilation=dilation, pad=pad)
    assert y2.shape == (2, Cout2, L)
    assert jnp.allclose(y2, r2, rtol=5e-2, atol=5e-2), "case2 mismatch"

    # bf16 output variant (for chaining into a bf16 consumer block).
    y2b = jax.block_until_ready(residual_block_1d(
        x2, p2, kernel_size=K, dilation=dilation, pad=pad,
        out_dtype=jnp.bfloat16))
    assert y2b.dtype == jnp.bfloat16
    assert jnp.allclose(y2b.astype(jnp.float32), r2, rtol=5e-2, atol=5e-2), \
        "case2 (bf16 out) mismatch"

    print("KERNEL_OK")
</pallas_src>

<mosaic_0001>
module attributes {stable_mosaic.version = 11 : i64} {
  func.func @kernel(%arg0: i32, %arg1: i32, %arg2: memref<1x4x128xf32, #tpu.memory_space<vmem>>, %arg3: memref<8x12xbf16, #tpu.memory_space<vmem>>, %arg4: memref<8x1xf32, #tpu.memory_space<vmem>>, %arg5: memref<8x24xbf16, #tpu.memory_space<vmem>>, %arg6: memref<8x1xf32, #tpu.memory_space<vmem>>, %arg7: memref<8x4xbf16, #tpu.memory_space<vmem>>, %arg8: memref<8x1xf32, #tpu.memory_space<vmem>>, %arg9: memref<1x8x128xf32, #tpu.memory_space<vmem>>, %arg10: memref<4x4xbf16, #tpu.memory_space<vmem>>, %arg11: memref<8x4xbf16, #tpu.memory_space<vmem>>) attributes {dimension_semantics = [#tpu.dimension_semantics<parallel>, #tpu.dimension_semantics<arbitrary>], iteration_bounds = array<i64: 2, 2>, scalar_prefetch = 0 : i64, scratch_operands = 2 : i64, tpu.core_type = #tpu.core_type<tc>, window_params = [{transform_indices = @transform_0, window_bounds = array<i64: 1, 4, 128>}, {pipeline_mode = #tpu.pipeline_mode<synchronous>, transform_indices = @transform_1, window_bounds = array<i64: 8, 12>}, {pipeline_mode = #tpu.pipeline_mode<synchronous>, transform_indices = @transform_2, window_bounds = array<i64: 8, 1>}, {pipeline_mode = #tpu.pipeline_mode<synchronous>, transform_indices = @transform_3, window_bounds = array<i64: 8, 24>}, {pipeline_mode = #tpu.pipeline_mode<synchronous>, transform_indices = @transform_4, window_bounds = array<i64: 8, 1>}, {pipeline_mode = #tpu.pipeline_mode<synchronous>, transform_indices = @transform_5, window_bounds = array<i64: 8, 4>}, {pipeline_mode = #tpu.pipeline_mode<synchronous>, transform_indices = @transform_6, window_bounds = array<i64: 8, 1>}, {transform_indices = @transform_7, window_bounds = array<i64: 1, 8, 128>}]} {
    %c0_i32 = arith.constant 0 : i32
    %0 = arith.cmpi eq, %arg1, %c0_i32 : i32
    %1 = arith.extui %0 : i1 to i32
    %c0_i32_0 = arith.constant 0 : i32
    %2 = arith.cmpi ne, %1, %c0_i32_0 : i32
    scf.if %2 {
      %cst_30 = arith.constant 0.000000e+00 : bf16
      %46 = vector.broadcast %cst_30 : bf16 to vector<4x4xbf16>
      %c0_31 = arith.constant 0 : index
      %c0_32 = arith.constant 0 : index
      %47 = vector.load %arg10[%c0_31, %c0_32] : memref<4x4xbf16, #tpu.memory_space<vmem>>, vector<4x4xbf16>
      tpu.vector_store %arg10[%c0_31, %c0_32], %46 {strides = array<i32>} : memref<4x4xbf16, #tpu.memory_space<vmem>>, vector<4x4xbf16>,
      %cst_33 = arith.constant 0.000000e+00 : bf16
      %48 = vector.broadcast %cst_33 : bf16 to vector<8x4xbf16>
      %c0_34 = arith.constant 0 : index
      %c0_35 = arith.constant 0 : index
      %49 = vector.load %arg11[%c0_34, %c0_35] : memref<8x4xbf16, #tpu.memory_space<vmem>>, vector<8x4xbf16>
      tpu.vector_store %arg11[%c0_34, %c0_35], %48 {strides = array<i32>} : memref<8x4xbf16, #tpu.memory_space<vmem>>, vector<8x4xbf16>,
    } else {
    }
    %c0 = arith.constant 0 : index
    %c0_1 = arith.constant 0 : index
    %c0_2 = arith.constant 0 : index
    %3 = vector.load %arg2[%c0, %c0_1, %c0_2] : memref<1x4x128xf32, #tpu.memory_space<vmem>>, vector<1x4x128xf32>
    %4 = vector.shape_cast %3 : vector<1x4x128xf32> to vector<4x128xf32>
    %5 = arith.truncf %4 : vector<4x128xf32> to vector<4x128xbf16>
    %c0_3 = arith.constant 0 : index
    %c0_4 = arith.constant 0 : index
    %6 = vector.load %arg10[%c0_3, %c0_4] : memref<4x4xbf16, #tpu.memory_space<vmem>>, vector<4x4xbf16>
    %7 = tpu.concatenate %6, %5 in 1 : vector<4x4xbf16>, vector<4x128xbf16> -> vector<4x132xbf16>
    %8 = vector.extract_strided_slice %7 {offsets = [0, 0], sizes = [4, 128], strides = [1, 1]} : vector<4x132xbf16> to vector<4x128xbf16>
    %9 = vector.extract_strided_slice %7 {offsets = [0, 2], sizes = [4, 128], strides = [1, 1]} : vector<4x132xbf16> to vector<4x128xbf16>
    %10 = vector.extract_strided_slice %7 {offsets = [0, 4], sizes = [4, 128], strides = [1, 1]} : vector<4x132xbf16> to vector<4x128xbf16>
    %11 = tpu.concatenate %8, %9, %10 in 0 : vector<4x128xbf16>, vector<4x128xbf16>, vector<4x128xbf16> -> vector<12x128xbf16>
    %c0_5 = arith.constant 0 : index
    %c0_6 = arith.constant 0 : index
    %12 = vector.load %arg3[%c0_5, %c0_6] : memref<8x12xbf16, #tpu.memory_space<vmem>>, vector<8x12xbf16>
    %cst = arith.constant dense<0.000000e+00> : vector<8x128xf32>
    %13 = tpu.matmul %12, %11, %cst {dimension_numbers = #tpu.dot_dimension_numbers<[1], [0], [0], [1], [0, 0, 1, 1], [], []>} : vector<8x12xbf16>, vector<12x128xbf16>, vector<8x128xf32> -> vector<8x128xf32>
    %c0_7 = arith.constant 0 : index
    %c0_8 = arith.constant 0 : index
    %14 = vector.load %arg4[%c0_7, %c0_8] : memref<8x1xf32, #tpu.memory_space<vmem>>, vector<8x1xf32>
    %15 = vector.broadcast %14 : vector<8x1xf32> to vector<8x128xf32>
    %16 = arith.addf %13, %15 : vector<8x128xf32>
    %cst_9 = arith.constant 0.000000e+00 : f32
    %17 = vector.broadcast %cst_9 : f32 to vector<8x128xf32>
    %18 = arith.maximumf %16, %17 : vector<8x128xf32>
    %19 = arith.truncf %18 : vector<8x128xf32> to vector<8x128xbf16>
    %c0_10 = arith.constant 0 : index
    %c0_11 = arith.constant 0 : index
    %20 = vector.load %arg11[%c0_10, %c0_11] : memref<8x4xbf16, #tpu.memory_space<vmem>>, vector<8x4xbf16>
    %21 = tpu.concatenate %20, %19 in 1 : vector<8x4xbf16>, vector<8x128xbf16> -> vector<8x132xbf16>
    %22 = vector.extract_strided_slice %21 {offsets = [0, 0], sizes = [8, 128], strides = [1, 1]} : vector<8x132xbf16> to vector<8x128xbf16>
    %23 = vector.extract_strided_slice %21 {offsets = [0, 2], sizes = [8, 128], strides = [1, 1]} : vector<8x132xbf16> to vector<8x128xbf16>
    %24 = vector.extract_strided_slice %21 {offsets = [0, 4], sizes = [8, 128], strides = [1, 1]} : vector<8x132xbf16> to vector<8x128xbf16>
    %25 = tpu.concatenate %22, %23, %24 in 0 : vector<8x128xbf16>, vector<8x128xbf16>, vector<8x128xbf16> -> vector<24x128xbf16>
    %c0_12 = arith.constant 0 : index
    %c0_13 = arith.constant 0 : index
    %26 = vector.load %arg5[%c0_12, %c0_13] : memref<8x24xbf16, #tpu.memory_space<vmem>>, vector<8x24xbf16>
    %cst_14 = arith.constant dense<0.000000e+00> : vector<8x128xf32>
    %27 = tpu.matmul %26, %25, %cst_14 {dimension_numbers = #tpu.dot_dimension_numbers<[1], [0], [0], [1], [0, 0, 1, 1], [], []>} : vector<8x24xbf16>, vector<24x128xbf16>, vector<8x128xf32> -> vector<8x128xf32>
    %c0_15 = arith.constant 0 : index
    %c0_16 = arith.constant 0 : index
    %28 = vector.load %arg6[%c0_15, %c0_16] : memref<8x1xf32, #tpu.memory_space<vmem>>, vector<8x1xf32>
    %29 = vector.broadcast %28 : vector<8x1xf32> to vector<8x128xf32>
    %30 = arith.addf %27, %29 : vector<8x128xf32>
    %cst_17 = arith.constant 0.000000e+00 : f32
    %31 = vector.broadcast %cst_17 : f32 to vector<8x128xf32>
    %32 = arith.maximumf %30, %31 : vector<8x128xf32>
    %c0_18 = arith.constant 0 : index
    %c0_19 = arith.constant 0 : index
    %33 = vector.load %arg7[%c0_18, %c0_19] : memref<8x4xbf16, #tpu.memory_space<vmem>>, vector<8x4xbf16>
    %cst_20 = arith.constant dense<0.000000e+00> : vector<8x128xf32>
    %34 = tpu.matmul %33, %5, %cst_20 {dimension_numbers = #tpu.dot_dimension_numbers<[1], [0], [0], [1], [0, 0, 1, 1], [], []>} : vector<8x4xbf16>, vector<4x128xbf16>, vector<8x128xf32> -> vector<8x128xf32>
    %c0_21 = arith.constant 0 : index
    %c0_22 = arith.constant 0 : index
    %35 = vector.load %arg8[%c0_21, %c0_22] : memref<8x1xf32, #tpu.memory_space<vmem>>, vector<8x1xf32>
    %36 = vector.broadcast %35 : vector<8x1xf32> to vector<8x128xf32>
    %37 = arith.addf %34, %36 : vector<8x128xf32>
    %38 = arith.addf %37, %32 : vector<8x128xf32>
    %c0_23 = arith.constant 0 : index
    %c0_24 = arith.constant 0 : index
    %c0_25 = arith.constant 0 : index
    %39 = vector.load %arg9[%c0_23, %c0_24, %c0_25] : memref<1x8x128xf32, #tpu.memory_space<vmem>>, vector<1x8x128xf32>
    %40 = vector.shape_cast %39 : vector<1x8x128xf32> to vector<8x128xf32>
    %41 = vector.shape_cast %38 : vector<8x128xf32> to vector<1x8x128xf32>
    tpu.vector_store %arg9[%c0_23, %c0_24, %c0_25], %41 {strides = array<i32>} : memref<1x8x128xf32, #tpu.memory_space<vmem>>, vector<1x8x128xf32>,
    %42 = vector.extract_strided_slice %5 {offsets = [0, 124], sizes = [4, 4], strides = [1, 1]} : vector<4x128xbf16> to vector<4x4xbf16>
    %c0_26 = arith.constant 0 : index
    %c0_27 = arith.constant 0 : index
    %43 = vector.load %arg10[%c0_26, %c0_27] : memref<4x4xbf16, #tpu.memory_space<vmem>>, vector<4x4xbf16>
    tpu.vector_store %arg10[%c0_26, %c0_27], %42 {strides = array<i32>} : memref<4x4xbf16, #tpu.memory_space<vmem>>, vector<4x4xbf16>,
    %44 = vector.extract_strided_slice %19 {offsets = [0, 124], sizes = [8, 4], strides = [1, 1]} : vector<8x128xbf16> to vector<8x4xbf16>
    %c0_28 = arith.constant 0 : index
    %c0_29 = arith.constant 0 : index
    %45 = vector.load %arg11[%c0_28, %c0_29] : memref<8x4xbf16, #tpu.memory_space<vmem>>, vector<8x4xbf16>
    tpu.vector_store %arg11[%c0_28, %c0_29], %44 {strides = array<i32>} : memref<8x4xbf16, #tpu.memory_space<vmem>>, vector<8x4xbf16>,
    return
  }
  func.func @transform_0(%arg0: i32, %arg1: i32) -> (i32, i32, i32) {
    %c0_i32 = arith.constant 0 : i32
    %c0_i32_0 = arith.constant 0 : i32
    return %arg0, %c0_i32, %arg1 : i32, i32, i32
  }
  func.func @transform_1(%arg0: i32, %arg1: i32) -> (i32, i32) {
    %c0_i32 = arith.constant 0 : i32
    %c0_i32_0 = arith.constant 0 : i32
    %c0_i32_1 = arith.constant 0 : i32
    return %c0_i32, %c0_i32_0 : i32, i32
  }
  func.func @transform_2(%arg0: i32, %arg1: i32) -> (i32, i32) {
    %c0_i32 = arith.constant 0 : i32
    %c0_i32_0 = arith.constant 0 : i32
    %c0_i32_1 = arith.constant 0 : i32
    return %c0_i32, %c0_i32_0 : i32, i32
  }
  func.func @transform_3(%arg0: i32, %arg1: i32) -> (i32, i32) {
    %c0_i32 = arith.constant 0 : i32
    %c0_i32_0 = arith.constant 0 : i32
    %c0_i32_1 = arith.constant 0 : i32
    return %c0_i32, %c0_i32_0 : i32, i32
  }
  func.func @transform_4(%arg0: i32, %arg1: i32) -> (i32, i32) {
    %c0_i32 = arith.constant 0 : i32
    %c0_i32_0 = arith.constant 0 : i32
    %c0_i32_1 = arith.constant 0 : i32
    return %c0_i32, %c0_i32_0 : i32, i32
  }
  func.func @transform_5(%arg0: i32, %arg1: i32) -> (i32, i32) {
    %c0_i32 = arith.constant 0 : i32
    %c0_i32_0 = arith.constant 0 : i32
    %c0_i32_1 = arith.constant 0 : i32
    return %c0_i32, %c0_i32_0 : i32, i32
  }
  func.func @transform_6(%arg0: i32, %arg1: i32) -> (i32, i32) {
    %c0_i32 = arith.constant 0 : i32
    %c0_i32_0 = arith.constant 0 : i32
    %c0_i32_1 = arith.constant 0 : i32
    return %c0_i32, %c0_i32_0 : i32, i32
  }
  func.func @transform_7(%arg0: i32, %arg1: i32) -> (i32, i32, i32) {
    %c0_i32 = arith.constant 0 : i32
    %c0_i32_0 = arith.constant 0 : i32
    return %arg0, %c0_i32, %arg1 : i32, i32, i32
  }
}

</mosaic_0001>

<bundles_post_ra>
// kernel: tpu_custom_call.1
= control target key start
LH: loop header
LB: loop body
LE: loop exit
PB: predicated region body
PF: predicated region fallthrough
CT: control target
= control target key end

     0   :  { %12 = vsyncpa [#allocation5], 0  ;;  %s985_s0 = inlined_call_operand.vmem [shape: f32[2,4,256], index: 0, kind: input, shape index: {}]   ;;  %s986_s1 = inlined_call_operand.vmem [shape: bf16[8,12], index: 1, kind: input, shape index: {}]   ;;  %s987_s2 = inlined_call_operand.vmem [shape: f32[8,1], index: 2, kind: input, shape index: {}]   ;;  %s988_s3 = inlined_call_operand.vmem [shape: bf16[8,24], index: 3, kind: input, shape index: {}]   ;;  %s989_s4 = inlined_call_operand.vmem [shape: f32[8,1], index: 4, kind: input, shape index: {}]   ;;  %s990_s5 = inlined_call_operand.vmem [shape: bf16[8,4], index: 5, kind: input, shape index: {}]   ;;  %s991_s6 = inlined_call_operand.vmem [shape: f32[8,1], index: 6, kind: input, shape index: {}]   ;;  %s992_s7 = inlined_call_operand.hbm [shape: f32[2,8,256], index: 7, kind: output, shape index: {}]  }
   0x1   :  { %14 = vsyncpa [#allocation5 + $0x1], 0  ;;  %s802_s24 = smov 0   ;;  %s804_s25 = smov 0  }
   0x2   :  { %s806_s26 = smov 0   ;;  %s808_s27 = smov 0  }
   0x3   :  { %s810_s28 = smov 0   ;;  %s812_s29 = smov 0  }
   0x4   :  { %s814_s30 = smov 0   ;;  %s816_s8 = smov 0  }
   0x5 LB: > { %s566_s9 = sadd.s32 4294967295, %s755_s8   ;;  %s567_s10 = sadd.s32 4294967294, %s755_s8   ;;  %s755_s8 = sphi %s816_s8, %s20_s8   ;;  %s751_s30 = sphi %s814_s30, %s1004_s30   ;;  %s747_s29 = sphi %s812_s29, %s1003_s29   ;;  %s743_s28 = sphi %s810_s28, %s1002_s28   ;;  %s739_s27 = sphi %s808_s27, %s1001_s27   ;;  %s735_s26 = sphi %s806_s26, %s1000_s26   ;;  %s731_s25 = sphi %s804_s25, %s999_s25   ;;  %s727_s24 = sphi %s802_s24, %s998_s24  }
   0x6   : > { %s29_s11 = sadd.s32 1, %s747_s29  ;;  %s32_s12 = sadd.s32 1, %s751_s30 }
   0x7   : > { %p30_p0 = scmp.ge.s32.totalorder %s29_s11, 2  ;;  %p205_p1 = scmp.ne.s32.totalorder %s735_s26, %s731_s25 }
   0x8   : > { %p206_p2 = scmp.eq.s32.totalorder %s566_s9, 3  ;;  %p211_p5 = scmp.ne.s32.totalorder %s731_s25, %s727_s24 }
   0x9   : > { %s1006_s11 = smov (%p30_p0, %s29_s11), 0  ;;  %s1008_s12 = smov (!%p30_p0, %s32_s12), %s751_s30 }
   0xa   : > { %s191_s13 = ssub.s32 %s747_s29, %s1006_s11  ;;  %p853_p3 = por %p206_p2, %p205_p1 }
   0xb   : > { %p34_p4 = scmp.ge.s32.totalorder %s1008_s12, 2  ;;  %p212_p6 = scmp.eq.s32.totalorder %s567_s10, 3 }
   0xc   : > { %p570_p7 = scmp.ge.s32.totalorder %s755_s8, 1  ;;  %p259_p9 = scmp.lt.s32.totalorder %s755_s8, 5 }
   0xd   : > { %s1010_s12 = smov (%p34_p4, %s1008_s12), 0  ;;  %p862_p8 = por %p212_p6, %p211_p5 }
   0xe   : > { %995 = sst [smem:[#allocation7_spill]] %s1010_s12  ;;  %s190_s16 = ssub.s32 %s751_s30, %s1010_s12 }
   0xf   : > { %s195_s17 = sadd.s32 1, %s735_s26  ;;  %s192_s18 = sor.u32 %s191_s13, %s190_s16 }
  0x10   : > { %p260_p10 = pnand %p570_p7, %p259_p9  ;;  %p193_p11 = scmp.eq.s32.totalorder %s192_s18, 0 }
  0x11   : > { %s291_s20 = sand.u32 (!%p260_p10), 1, %s731_s25   ;;  %p294_p12 = scmp.lt.s32.totalorder (!%p260_p10), %s743_s28, 1 }
  0x12   : > { %s871_s19 = scalar_select %p193_p11, %s735_s26, %s195_s17  }
  0x13   : > { %263 = sbr.rel (%p260_p10) target bundleno = 803 (0x323), region = 48  ;;  %s877_s21 = sshll.u32 (!%p260_p10), %s291_s20, 3 }
  0x14   : > { %p296_p13 = scmp.lt.s32.totalorder (!%p260_p10), %s739_s27, 1  ;;  %s293_s12 = scalar_lea.vmem (!%p260_p10), [#allocation4], %s877_s21 }
  0x15   : > { %p574_p0 = scmp.ne.s32.totalorder (!%p260_p10), %s739_s27, 0 }
  0x18   : > { %s295_s22 = scalar_select %p294_p12, %s743_s28, 1 }
  0x19   : > { %s297_s23 = scalar_select %p296_p13, %s739_s27, 1 }
  0x1a   : > { %s572_s9 = sshll.u32 %s295_s22, 1  ;;  %306 = sbr.rel (%p574_p0) target bundleno = 34 (0x22), region = 52 }
  0x1b   : > { %s299_s10 = sadd.s32 %s572_s9, %s297_s23 }
  0x1c   : > { %s573_s13 = sshll.u32 %s299_s10, 2 }
  0x1d   : > { %s301_s18 = scalar_lea.vmem %s985_s0, %s573_s13 }
  0x1f   : > { %vm307_vm0 = vcmask 25600   ;;  %vm309_vm1 = vcmask 27648   ;;  %v757_v0 = vmov 0  }
  0x20   : > { %308 = vst.msk [vmem:[#allocation2] sm:$0x3] %vm307_vm0, %v757_v0 }
  0x21   : > { %310 = vst.msk [vmem:[#allocation3] sm:$0xf] %vm309_vm1, %v757_v0 }
  0x22 PF: > { %v311_v1 = vld [vmem:[%s301_s18] sm:$0xf]  ;;  %s758_s22 = smov 4   ;;  %vm319_vm2 = vcmask 31744   ;;  %s759_s23 = smov 124   ;;  %v761_v13 = vmov 0  }
  0x23   : > { %v887_v2 = vpack.c.bf16 %v311_v1, %v311_v1  ;;  %s760_s9 = smov 126   ;;  %v347_v12 = vld [vmem:[%s987_s2] sm:$0xff]  ;;  %659 = vset.pattern.permute.xlu2 %v761_v13  ;;  %660 = vset.pattern.permute.xlu0 %v761_v13  ;;  %vm330_vm3 = vcmask 1031168   ;;  %vm338_vm4 = vcmask 1014784   ;;  %vm340_vm5 = vcmask 1041408   ;;  %s579_s18 = sshll.u32 %s743_s28, 1 }
  0x24   : > { %vm343_vm6 = vcmask 1043456   ;;  %vm357_vm7 = vcmask 1045504   ;;  %v346_v23 = vld [vmem:[%s986_s1] sm:$0xf]  ;;  %vm353_vm8 = vcmask 97280   ;;  %vm468_vm9 = vcmask 27648   ;;  %s481_s10 = sadd.s32 %s739_s27, %s579_s18 }
  0x25   : > { %v315_v3 = vunpack.c.l.b16 %v887_v2  ;;  %v401_v36 = vld [vmem:[%s989_s4] sm:$0xff]  ;;  %v439_v38 = vsel %vm340_vm5, %v887_v2, 0  ;;  %v456_v42 = vrot.slane %v887_v2, 2  ;;  %vm407_vm10 = vcmask 195584   ;;  %s580_s13 = sshll.u32 %s481_s10, 3  ;;  %s471_s27 = scalar_lea.sflag [#allocation5], %s291_s20 }
  0x26   : > { %448 = vmatpush.bf16.msra.mxu2 %v439_v38  ;;  %v428_v39 = vld [vmem:[%s990_s5] sm:$0xf]  ;;  %vm463_vm11 = vcmask 25600   ;;  %s483_s17 = scalar_lea.hbm %s992_s7, %s580_s13  ;;  %s681_s16 = scalar_lea.hbm %s992_s7, 32 }
  0x27   : > { %v316_v4 = vpack.c.b16 %v315_v3, %v315_v3  ;;  %v313_v5 = vld [vmem:[#allocation2] sm:$0x3]  ;;  %v458_v44 = vsel %vm340_vm5, %v887_v2, %v456_v42 }
  0x28   : > { %v375_v32 = vld [vmem:[#allocation3] sm:$0xf] }
  0x29   : > { %317 = vrot.lane.b32.xlu0 %v316_v4, %s758_s22  ;;  %577 = vmatmul.msk.bf16.vlgmr.msra.gmra.mxu2 %vm319_vm2, %v428_v39  ;;  %v429_v41 = vld [vmem:[%s991_s6] sm:$0xff] }
  0x2a   : > { %v400_v53 = vld [vmem:[%s988_s3] sm:$0xf] }
  0x9b   : > { %v318_v6 = vpop.permute.xlu0 %317 }
  0x9c   : > { %v322_v7 = vsel %vm319_vm2, %v313_v5, %v318_v6  ;;  %v333_v8 = vrot.slane %v318_v6, 4  ;;  %v325_v9 = vrot.slane %v318_v6, 6 }
  0x9d   : > { %v324_v10 = vrot.slane %v322_v7, 6  ;;  %v332_v11 = vrot.slane %v322_v7, 4 }
  0x9e   : > { %336 = vrot.lane.b32.xlu2 %v333_v8, %s759_s23  ;;  %328 = vrot.lane.b32.xlu1 %v325_v9, %s760_s9 }
  0x9f   : > { %326 = vrot.lane.b32.xlu0 %v324_v10, %s760_s9 }
  0xa6   : > { %334 = vrot.lane.b32.xlu1 %v332_v11, %s759_s23  ;;  %350 = vperm.xlu2 %659, %v347_v12  }
  0xac   : > { %v450_v54 = vpop.f32.mrf.mxu2 }
  0xb4   : > { %v452_v55 = vpop.f32.mrf.mxu2 }
  0xf8   : > { %v337_v17 = vpop.permute.xlu2 %336 }
 0x100   : > { %v351_v24 = vpop.permute.xlu2 %350 }
 0x110   : > { %v329_v14 = vpop.permute.xlu1 %328 }
 0x111   : > { %v327_v15 = vpop.permute.xlu0 %326 }
 0x112   : > { %v331_v16 = vsel %vm330_vm3, %v327_v15, %v329_v14 }
 0x113   : > { %v342_v20 = vsel %vm340_vm5, %v322_v7, %v331_v16 }
 0x118   : > { %v335_v18 = vpop.permute.xlu1 %334 }
 0x119   : > { %v339_v19 = vsel %vm338_vm4, %v335_v18, %v337_v17 }
 0x11a   : > { %v345_v21 = vsel %vm343_vm6, %v342_v20, %v339_v19 }
 0x11b   : > { %v358_v22 = vsel %vm357_vm7, %v345_v21, 0 }
 0x11c   : > { %367 = vmatpush.bf16.msra.mxu0 %v358_v22 }
 0x11f   : > { %575 = vmatmul.msk.bf16.vlgmr.msra.gmra.mxu0 %vm353_vm8, %v346_v23 }
 0x19c   : > { %v369_v25 = vpop.f32.mrf.mxu0 }
 0x19d   : > { %v370_v26 = vadd.f32 %v369_v25, %v351_v24 }
 0x19f   : > { %v373_v27 = vmax.f32 %v370_v26, 0.0 }
 0x1a1   : > { %v374_v28 = vpack.c.bf16 %v373_v27, %v373_v27 }
 0x1a3   : > { %v377_v29 = vunpack.c.l.b16 %v374_v28 }
 0x1a4   : > { %v371_v30 = vpop.f32.mrf.mxu0 }
 0x1a5   : > { %v378_v31 = vpack.c.b16 %v377_v29, %v377_v29 }
 0x1a7   : > { %379 = vrot.lane.b32.xlu0 %v378_v31, %s758_s22 }
 0x219   : > { %v380_v33 = vpop.permute.xlu0 %379 }
 0x21a   : > { %394 = vrot.lane.b32.xlu2 %v380_v33, %s759_s23  ;;  %v383_v34 = vsel %vm319_vm2, %v375_v32, %v380_v33  ;;  %v386_v37 = vrot.slane %v380_v33, 4 }
 0x21b   : > { %392 = vrot.lane.b32.xlu1 %v383_v34, %s759_s23  ;;  %v385_v35 = vrot.slane %v383_v34, 4 }
 0x21d   : > { %387 = vrot.lane.b32.xlu0 %v385_v35, %s760_s9 }
 0x222   : > { %404 = vperm.xlu2 %659, %v401_v36  }
 0x223   : > { %389 = vrot.lane.b32.xlu1 %v386_v37, %s760_s9  ;;  %s485_s9 = sshll.u32 %s293_s12, 4  ;;  %s486_s9 = int_to_ptr.vmem [resolvable:$true] %s485_s9 }
 0x225   : > { %432 = vperm.xlu0 %660, %v429_v41  }
 0x22a   : > { %465 = vrot.lane.b32.xlu2 %v374_v28, %s758_s22 }
 0x22b   : > { %460 = vrot.lane.b32.xlu1 %v458_v44, %s758_s22  ;;  %s487_s22 = sshll.u32 %s483_s17, 4  ;;  %s488_s22 = int_to_ptr.hbm [resolvable:$true] %s487_s22 }
 0x22c   : > { %s675_s28 = sshra.s32 %s488_s22, 4  ;;  %s676_s28 = int_to_ptr.hbm [resolvable:$true] %s675_s28 }
 0x22d   : > { %s677_s18 = scalar_lea.hbm %s676_s28, 8  ;;  %p682_p5 = scmp.lt.s32.totalorder %s676_s28, %s992_s7 }
 0x22e   : > { %p678_p1 = scmp.ne.s32.totalorder %s676_s28, %s677_s18  ;;  %p683_p6 = scmp.lt.s32.totalorder %s681_s16, %s677_s18 }
 0x230   : > { %p679_p2 = pnand %p678_p1, %p853_p3  ;;  %p684_p7 = por %p683_p6, %p682_p5 }
 0x232   : > { %p680_p4 = pneg %p679_p2 }
 0x234   : > { %p685_p9 = pnand %p684_p7, %p680_p4 }
 0x274   : > { %v395_v40 = vpop.permute.xlu2 %394 }
 0x27c   : > { %v405_v43 = vpop.permute.xlu2 %404 }
 0x284   : > { %v466_v45 = vpop.permute.xlu2 %465 }
 0x285   : > { %469 = vst.msk [vmem:[#allocation3] sm:$0xf] %vm468_vm9, %v466_v45 }
 0x28d   : > { %v393_v46 = vpop.permute.xlu1 %392 }
 0x28e   : > { %v396_v47 = vsel %vm338_vm4, %v393_v46, %v395_v40 }
 0x28f   : > { %v412_v48 = vsel %vm343_vm6, %v396_v47, 0  ;;  %v388_v49 = vpop.permute.xlu0 %387 }
 0x290   : > { %420 = vmatpush.bf16.msra.mxu1 %v412_v48 }
 0x295   : > { %v390_v50 = vpop.permute.xlu1 %389 }
 0x296   : > { %v391_v51 = vsel %vm330_vm3, %v388_v49, %v390_v50 }
 0x297   : > { %v398_v52 = vsel %vm343_vm6, %v383_v34, %v391_v51  ;;  %v433_v57 = vpop.permute.xlu0 %432 }
 0x298   : > { %421 = vmatpush.bf16.msra.mxu1 %v398_v52  ;;  %v451_v60 = vadd.f32 %v450_v54, %v433_v57 }
 0x29b   : > { %576 = vmatmul.msk.bf16.vlgmr.msra.gmra.mxu1 %vm407_vm10, %v400_v53 }
 0x29d   : > { %v461_v56 = vpop.permute.xlu1 %460 }
 0x29e   : > { %464 = vst.msk [vmem:[#allocation2] sm:$0x3] %vm463_vm11, %v461_v56 }
 0x318   : > { %v423_v58 = vpop.f32.mrf.mxu1 }
 0x319   : > { %v424_v59 = vadd.f32 %v423_v58, %v405_v43 }
 0x31b   : > { %v427_v61 = vmax.f32 %v424_v59, 0.0 }
 0x31d   : > { %v454_v62 = vadd.f32 %v451_v60, %v427_v61 }
 0x31f   : > { %455 = vst [vmem:[%s293_s12] sm:$0xff] %v454_v62 }
 0x320   : > { %v425_v63 = vpop.f32.mrf.mxu1 }
 0x321   : > { %688 = shalt.err (!%p685_p9)
}
 0x322   : > { %583 = dma.vmem_to_hbm [thread:$0]  (%p853_p3), %s486_s9, 128, %s488_s22, %s471_s27  }
 0x323 PF: > { %p589_p10 = scmp.ge.s32.totalorder %s755_s8, 2  ;;  %s499_s12 = sand.u32 1, %s727_s24  }
 0x324   : > { %s500_s20 = scalar_lea.sflag [#allocation5], %s499_s12 }
 0x325   : > { %p586_p11 = pnand %p589_p10, %p862_p8 }
 0x327   : > { %p587_p12 = pneg %p586_p11 }
 0x329   : > { %722 = dma.done.wait (%p587_p12), %s500_s20, 128  }
 0x32a   : > { %724 = vsyncadd (%p587_p12), %s500_s20, 4294967168  ;;  %s20_s8 = sadd.s32 1, %s755_s8   ;;  %s997_s14 = sld [smem:[#allocation7_spill]] }
 0x32b   : > { %p17_p13 = scmp.ge.s32.totalorder %s20_s8, 6   ;;  %s998_s24 = smov %s731_s25 }
 0x32c   : > { %s999_s25 = smov %s735_s26  ;;  %s1000_s26 = smov %s871_s19 }
 0x32d   : > { %s1001_s27 = smov %s747_s29  ;;  %s1002_s28 = smov %s751_s30 }
 0x32e   : > { %s1003_s29 = smov %s1006_s11  ;;  %19 = sbr.rel (!%p17_p13) target bundleno = 5 (0x5), region = 87 }
 0x330   : > { %s1004_s30 = smov %s997_s14 }
 0x333   :  { %506 = vsyncpa [#allocation5], 1 }
 0x334   :  { %508 = vsyncpa [#allocation5 + $0x1], 1 }

</bundles_post_ra>
